<compile_context>
chip_gen: v6e
topology: v6e:2x2x1
jax: 0.10.0
libtpu: 0.0.40
codegen_flags: <defaults>
</compile_context>

<pallas_src>
import jax
import jax.numpy as jnp
from jax.experimental import pallas as pl
from jax.experimental.pallas import tpu as pltpu

# ---- model dimensions (small, consistent with the module's forward) ----
B = 8            # batch (one (8,128) tile)
S = 8            # token sequence length fed to the (synthetic) BERT
VOCAB = 32       # synthetic vocab
D_BERT = 128     # BERT hidden size (module uses 768)
H = 32           # lstm_hidden     (module uses 128)
NUM_CLASSES = 3
OUT_PAD = 128    # lane-dense padded output width (>= NUM_CLASSES)
BN_EPS = 1e-5

GATE_COLS = 6 * H            # 192: [i_f, i_b, o_f, o_b, g_f, g_b]  (forget gate dropped)

# ---- weight-slab row offsets (bf16-friendly: multiples of 16) ----
R_W0 = 0                     # (D_BERT, 6H) fused layer-0 weight
R_W1 = R_W0 + D_BERT         # (2H, 6H)     fused layer-1 weight
R_WFC = R_W1 + 2 * H         # (2H, OUT_PAD) BN-folded, lane-padded FC weight
W_ROWS = R_WFC + 2 * H       # 256 rows x 192 cols

# ---- bias-slab row offsets (f32, multiples of 8) ----
RB_B0 = 0                    # (1, 6H) fused layer-0 bias (b_ih + b_hh)
RB_B1 = 8                    # (1, 6H) fused layer-1 bias
RB_BFC = 16                  # (1, OUT_PAD) BN-folded FC bias
B_ROWS = 24                  # 24 rows x 192 cols


def _bilstm_step(x, w, b):
    """One bidirectional PyTorch LSTM layer over a length-1 sequence, h0=c0=0.

    `w` is the fused fwd+bwd weight with columns [i_f,i_b,o_f,o_b,g_f,g_b]
    (forget-gate columns removed: c0 == 0 makes them dead); `b` = b_ih + b_hh
    (W_hh vanishes because h0 == 0).  Exact, not approximate.
    Returns lane-contiguous [h_fwd, h_bwd] of shape (B, 2H).
    """
    gates = jnp.dot(x, w, preferred_element_type=jnp.float32) + b   # (B, 6H)
    sig = jax.nn.sigmoid(gates[:, 0:4 * H])    # one 128-lane sigmoid: [i_f,i_b,o_f,o_b]
    i = sig[:, 0:2 * H]                        # [i_f, i_b]
    o = sig[:, 2 * H:4 * H]                    # [o_f, o_b]
    g = jnp.tanh(gates[:, 4 * H:6 * H])        # [g_f, g_b]
    c = i * g                                  # c = i*g  (forget term is zero)
    return o * jnp.tanh(c)                     # (B, 2H) = [h_f, h_b]


def _indobert_bilstm_kernel(ids_ref, mask_ref, emb_ref, w_ref, b_ref, out_ref):
    # ---- fused synthetic-encoder pool: masked mean of token embeddings ----
    # TODO(synk): the frozen pretrained IndoBERT encoder (AutoModel.from_pretrained)
    # cannot be reproduced without a checkpoint; it is replaced by a deterministic
    # embedding table + attention-masked mean pool fused into this kernel.
    ids = ids_ref[...]                                   # (B, S) int32
    mask = mask_ref[...].astype(jnp.float32)             # (B, S)
    viota = jax.lax.broadcasted_iota(jnp.int32, (B, VOCAB), 1)
    w_pool = jnp.zeros((B, VOCAB), jnp.float32)
    for s in range(S):                                   # S == 8, fully unrolled
        sel = (ids[:, s:s + 1] == viota).astype(jnp.float32)
        w_pool = w_pool + sel * mask[:, s:s + 1]         # masked token counts
    emb_sum = jnp.dot(w_pool, emb_ref[...],
                      preferred_element_type=jnp.float32)          # (B, D_BERT)
    denom = jnp.maximum(jnp.sum(mask, axis=1, keepdims=True), 1.0)  # (B, 1)
    x = emb_sum / denom                                             # (B, D_BERT)

    # ---- parameters (bf16 weight slab upcast to f32 right after the DMA) ----
    w0 = w_ref[R_W0:R_W0 + D_BERT, :].astype(jnp.float32)            # (128, 192)
    w1 = w_ref[R_W1:R_W1 + 2 * H, :].astype(jnp.float32)             # (64, 192)
    wfc = w_ref[R_WFC:R_WFC + 2 * H, 0:OUT_PAD].astype(jnp.float32)  # (64, 128)
    b0 = b_ref[RB_B0:RB_B0 + 1, :]                                   # (1, 192)
    b1 = b_ref[RB_B1:RB_B1 + 1, :]                                   # (1, 192)
    bfc = b_ref[RB_BFC:RB_BFC + 1, 0:OUT_PAD]                        # (1, 128)

    # ---- 2-layer bidirectional LSTM over the length-1 sequence ----
    h0 = _bilstm_step(x, w0, b0)     # inter-layer dropout = identity (eval)
    h1 = _bilstm_step(h0, w1, b1)

    # ---- BatchNorm1d(eval) + Dropout(eval) + Linear: BN folded into wfc/bfc ----
    out = jnp.dot(h1, wfc, preferred_element_type=jnp.float32) + bfc   # (B, 128)
    out_ref[...] = out.astype(out_ref.dtype)


def indobert_bilstm_predict(input_ids, attention_mask, emb_table, w_slab, b_slab):
    """Whole predict path (encoder pool + LSTM + BN + FC) in one Pallas call."""
    vmem = pl.BlockSpec(memory_space=pltpu.MemorySpace.VMEM)
    out = pl.pallas_call(
        _indobert_bilstm_kernel,
        out_shape=jax.ShapeDtypeStruct((input_ids.shape[0], OUT_PAD), jnp.float32),
        in_specs=[vmem, vmem, vmem, vmem, vmem],
        out_specs=vmem,
    )(input_ids, attention_mask, emb_table, w_slab, b_slab)
    return out[:, :NUM_CLASSES]


predict = jax.jit(indobert_bilstm_predict)


# ---------------------------------------------------------------------------
# Host-side parameter construction / repacking
# ---------------------------------------------------------------------------
def make_params(key):
    """Raw per-direction params in PyTorch layout (pre-transposed to (in, 4H),
    column gate order i, f, g, o; b = b_ih + b_hh folded)."""
    ks = jax.random.split(key, 20)

    def init(k, shape, scale=0.1):
        return jax.random.normal(k, shape, dtype=jnp.float32) * scale

    params = {
        "w0f": init(ks[0], (D_BERT, 4 * H)),
        "b0f": init(ks[1], (1, 4 * H)),
        "w0b": init(ks[2], (D_BERT, 4 * H)),
        "b0b": init(ks[3], (1, 4 * H)),
        "w1f": init(ks[4], (2 * H, 4 * H)),
        "b1f": init(ks[5], (1, 4 * H)),
        "w1b": init(ks[6], (2 * H, 4 * H)),
        "b1b": init(ks[7], (1, 4 * H)),
    }

    # BatchNorm1d(2H), eval mode: fold gamma/beta/running stats into scale/shift.
    gamma = 1.0 + init(ks[8], (1, 2 * H))
    beta = init(ks[9], (1, 2 * H))
    running_mean = init(ks[10], (1, 2 * H))
    running_var = 1.0 + jnp.abs(init(ks[11], (1, 2 * H)))
    bn_scale = gamma / jnp.sqrt(running_var + BN_EPS)
    params["bn_scale"] = bn_scale
    params["bn_shift"] = beta - running_mean * bn_scale

    # nn.Linear(2H, NUM_CLASSES), weight pre-transposed to (2H, C).
    params["wfc"] = init(ks[12], (2 * H, NUM_CLASSES))
    params["bfc"] = init(ks[13], (1, NUM_CLASSES))

    emb_table = init(ks[14], (VOCAB, D_BERT), scale=1.0)
    return params, emb_table


def _fuse_directions(wf, wb):
    """Fuse fwd/bwd params (in, 4H each, PyTorch gate order i,f,g,o) into one
    (in, 6H) matrix with columns [i_f, i_b, o_f, o_b, g_f, g_b]; the forget-gate
    columns are dropped (mathematically dead when c0 == 0)."""
    i_f, _f_f, g_f, o_f = jnp.split(wf, 4, axis=1)
    i_b, _f_b, g_b, o_b = jnp.split(wb, 4, axis=1)
    return jnp.concatenate([i_f, i_b, o_f, o_b, g_f, g_b], axis=1)


def pack_slabs(params, weight_dtype=jnp.bfloat16):
    """Fuse directions, drop forget gates, fold BN into FC, lane-pad FC, and pack
    matmul weights into one (W_ROWS, 192) slab (cast to `weight_dtype`) and the
    f32 biases into a small (B_ROWS, 192) slab."""
    hp = jax.lax.Precision.HIGHEST
    w0 = _fuse_directions(params["w0f"], params["w0b"])          # (128, 192)
    w1 = _fuse_directions(params["w1f"], params["w1b"])          # (64, 192)
    b0 = _fuse_directions(params["b0f"], params["b0b"])          # (1, 192)
    b1 = _fuse_directions(params["b1f"], params["b1b"])          # (1, 192)

    # BN fold (f32): y = (h*scale + shift) @ W + b  ==  h @ W' + b'
    wfc = params["wfc"] * params["bn_scale"].reshape(2 * H, 1)                      # (64, C)
    bfc = jnp.dot(params["bn_shift"], params["wfc"], precision=hp) + params["bfc"]  # (1, C)

    w_slab = jnp.zeros((W_ROWS, GATE_COLS), jnp.float32)
    w_slab = w_slab.at[R_W0:R_W0 + D_BERT, :].set(w0)
    w_slab = w_slab.at[R_W1:R_W1 + 2 * H, :].set(w1)
    w_slab = w_slab.at[R_WFC:R_WFC + 2 * H, :NUM_CLASSES].set(wfc)
    w_slab = w_slab.astype(weight_dtype)

    b_slab = jnp.zeros((B_ROWS, GATE_COLS), jnp.float32)
    b_slab = b_slab.at[RB_B0:RB_B0 + 1, :].set(b0)
    b_slab = b_slab.at[RB_B1:RB_B1 + 1, :].set(b1)
    b_slab = b_slab.at[RB_BFC:RB_BFC + 1, :NUM_CLASSES].set(bfc)
    return w_slab, b_slab


# ---------------------------------------------------------------------------
# Pure-JAX references (original unfused params, PyTorch gate order, unfolded BN)
# ---------------------------------------------------------------------------
def synthetic_bert_cls(input_ids, attention_mask, emb_table):
    emb = emb_table[input_ids]                               # (B, S, D_BERT)
    mask = attention_mask[..., None].astype(jnp.float32)     # (B, S, 1)
    pooled = (emb * mask).sum(axis=1) / jnp.maximum(mask.sum(axis=1), 1.0)
    return pooled.astype(jnp.float32)                        # (B, D_BERT)


def reference_head(x, params):
    hp = jax.lax.Precision.HIGHEST

    def cell(xx, w, b):
        gates = jnp.dot(xx, w, precision=hp) + b
        i = jax.nn.sigmoid(gates[:, 0 * H:1 * H])
        g = jnp.tanh(gates[:, 2 * H:3 * H])
        o = jax.nn.sigmoid(gates[:, 3 * H:4 * H])
        return o * jnp.tanh(i * g)

    h0 = jnp.concatenate([cell(x, params["w0f"], params["b0f"]),
                          cell(x, params["w0b"], params["b0b"])], axis=-1)
    h1 = jnp.concatenate([cell(h0, params["w1f"], params["b1f"]),
                          cell(h0, params["w1b"], params["b1b"])], axis=-1)
    y = h1 * params["bn_scale"] + params["bn_shift"]
    return jnp.dot(y, params["wfc"], precision=hp) + params["bfc"]


if __name__ == "__main__":
    key = jax.random.PRNGKey(0)
    k_param, k_ids, k_len = jax.random.split(key, 3)

    params, emb_table = make_params(k_param)

    input_ids = jax.random.randint(k_ids, (B, S), 0, VOCAB, dtype=jnp.int32)
    lengths = jax.random.randint(k_len, (B, 1), 1, S + 1, dtype=jnp.int32)
    attention_mask = (jnp.arange(S, dtype=jnp.int32)[None, :] < lengths).astype(jnp.int32)

    # Pure-JAX f32 reference for the whole path.
    bert_cls = synthetic_bert_cls(input_ids, attention_mask, emb_table)
    ref = reference_head(bert_cls, params)

    # --- exactness build: f32 weight slab, tight tolerance ---
    w_slab32, b_slab = pack_slabs(params, weight_dtype=jnp.float32)
    out32 = jax.block_until_ready(
        predict(input_ids, attention_mask, emb_table, w_slab32, b_slab))
    assert out32.shape == (B, NUM_CLASSES), out32.shape
    assert jnp.allclose(out32, ref, atol=1e-4, rtol=1e-4), (
        f"f32 build max abs diff {jnp.max(jnp.abs(out32 - ref))}")

    # --- performance build: bf16 weight slab (half the weight DMA bytes) ---
    w_slab16, b_slab16 = pack_slabs(params, weight_dtype=jnp.bfloat16)
    out16 = jax.block_until_ready(
        predict(input_ids, attention_mask, emb_table, w_slab16, b_slab16))
    assert out16.shape == (B, NUM_CLASSES), out16.shape
    assert jnp.allclose(out16, ref, atol=2e-2, rtol=2e-2), (
        f"bf16 build max abs diff {jnp.max(jnp.abs(out16 - ref))}")

    print("KERNEL_OK")
</pallas_src>

<mosaic_0001>
module attributes {stable_mosaic.version = 11 : i64} {
  func.func @_indobert_bilstm_kernel(%arg0: memref<8x8xi32, #tpu.memory_space<vmem>>, %arg1: memref<8x8xi32, #tpu.memory_space<vmem>>, %arg2: memref<32x128xf32, #tpu.memory_space<vmem>>, %arg3: memref<256x192xf32, #tpu.memory_space<vmem>>, %arg4: memref<24x192xf32, #tpu.memory_space<vmem>>, %arg5: memref<8x128xf32, #tpu.memory_space<vmem>>) attributes {dimension_semantics = [], scalar_prefetch = 0 : i64, scratch_operands = 0 : i64, tpu.core_type = #tpu.core_type<tc>} {
    %c0 = arith.constant 0 : index
    %c0_0 = arith.constant 0 : index
    %0 = vector.load %arg0[%c0, %c0_0] : memref<8x8xi32, #tpu.memory_space<vmem>>, vector<8x8xi32>
    %c0_1 = arith.constant 0 : index
    %c0_2 = arith.constant 0 : index
    %1 = vector.load %arg1[%c0_1, %c0_2] : memref<8x8xi32, #tpu.memory_space<vmem>>, vector<8x8xi32>
    %2 = arith.sitofp %1 : vector<8x8xi32> to vector<8x8xf32>
    %3 = tpu.iota {dimensions = array<i32: 1>} : vector<8x32xi32>
    %cst = arith.constant 0.000000e+00 : f32
    %4 = vector.broadcast %cst : f32 to vector<8x32xf32>
    %5 = vector.extract_strided_slice %0 {offsets = [0, 0], sizes = [8, 1], strides = [1, 1]} : vector<8x8xi32> to vector<8x1xi32>
    %6 = vector.broadcast %5 : vector<8x1xi32> to vector<8x32xi32>
    %7 = arith.cmpi eq, %6, %3 : vector<8x32xi32>
    %8 = arith.extui %7 : vector<8x32xi1> to vector<8x32xi32>
    %9 = arith.sitofp %8 : vector<8x32xi32> to vector<8x32xf32>
    %10 = vector.extract_strided_slice %2 {offsets = [0, 0], sizes = [8, 1], strides = [1, 1]} : vector<8x8xf32> to vector<8x1xf32>
    %11 = vector.broadcast %10 : vector<8x1xf32> to vector<8x32xf32>
    %12 = arith.mulf %9, %11 : vector<8x32xf32>
    %13 = arith.addf %4, %12 : vector<8x32xf32>
    %14 = vector.extract_strided_slice %0 {offsets = [0, 1], sizes = [8, 1], strides = [1, 1]} : vector<8x8xi32> to vector<8x1xi32>
    %15 = vector.broadcast %14 : vector<8x1xi32> to vector<8x32xi32>
    %16 = arith.cmpi eq, %15, %3 : vector<8x32xi32>
    %17 = arith.extui %16 : vector<8x32xi1> to vector<8x32xi32>
    %18 = arith.sitofp %17 : vector<8x32xi32> to vector<8x32xf32>
    %19 = vector.extract_strided_slice %2 {offsets = [0, 1], sizes = [8, 1], strides = [1, 1]} : vector<8x8xf32> to vector<8x1xf32>
    %20 = vector.broadcast %19 : vector<8x1xf32> to vector<8x32xf32>
    %21 = arith.mulf %18, %20 : vector<8x32xf32>
    %22 = arith.addf %13, %21 : vector<8x32xf32>
    %23 = vector.extract_strided_slice %0 {offsets = [0, 2], sizes = [8, 1], strides = [1, 1]} : vector<8x8xi32> to vector<8x1xi32>
    %24 = vector.broadcast %23 : vector<8x1xi32> to vector<8x32xi32>
    %25 = arith.cmpi eq, %24, %3 : vector<8x32xi32>
    %26 = arith.extui %25 : vector<8x32xi1> to vector<8x32xi32>
    %27 = arith.sitofp %26 : vector<8x32xi32> to vector<8x32xf32>
    %28 = vector.extract_strided_slice %2 {offsets = [0, 2], sizes = [8, 1], strides = [1, 1]} : vector<8x8xf32> to vector<8x1xf32>
    %29 = vector.broadcast %28 : vector<8x1xf32> to vector<8x32xf32>
    %30 = arith.mulf %27, %29 : vector<8x32xf32>
    %31 = arith.addf %22, %30 : vector<8x32xf32>
    %32 = vector.extract_strided_slice %0 {offsets = [0, 3], sizes = [8, 1], strides = [1, 1]} : vector<8x8xi32> to vector<8x1xi32>
    %33 = vector.broadcast %32 : vector<8x1xi32> to vector<8x32xi32>
    %34 = arith.cmpi eq, %33, %3 : vector<8x32xi32>
    %35 = arith.extui %34 : vector<8x32xi1> to vector<8x32xi32>
    %36 = arith.sitofp %35 : vector<8x32xi32> to vector<8x32xf32>
    %37 = vector.extract_strided_slice %2 {offsets = [0, 3], sizes = [8, 1], strides = [1, 1]} : vector<8x8xf32> to vector<8x1xf32>
    %38 = vector.broadcast %37 : vector<8x1xf32> to vector<8x32xf32>
    %39 = arith.mulf %36, %38 : vector<8x32xf32>
    %40 = arith.addf %31, %39 : vector<8x32xf32>
    %41 = vector.extract_strided_slice %0 {offsets = [0, 4], sizes = [8, 1], strides = [1, 1]} : vector<8x8xi32> to vector<8x1xi32>
    %42 = vector.broadcast %41 : vector<8x1xi32> to vector<8x32xi32>
    %43 = arith.cmpi eq, %42, %3 : vector<8x32xi32>
    %44 = arith.extui %43 : vector<8x32xi1> to vector<8x32xi32>
    %45 = arith.sitofp %44 : vector<8x32xi32> to vector<8x32xf32>
    %46 = vector.extract_strided_slice %2 {offsets = [0, 4], sizes = [8, 1], strides = [1, 1]} : vector<8x8xf32> to vector<8x1xf32>
    %47 = vector.broadcast %46 : vector<8x1xf32> to vector<8x32xf32>
    %48 = arith.mulf %45, %47 : vector<8x32xf32>
    %49 = arith.addf %40, %48 : vector<8x32xf32>
    %50 = vector.extract_strided_slice %0 {offsets = [0, 5], sizes = [8, 1], strides = [1, 1]} : vector<8x8xi32> to vector<8x1xi32>
    %51 = vector.broadcast %50 : vector<8x1xi32> to vector<8x32xi32>
    %52 = arith.cmpi eq, %51, %3 : vector<8x32xi32>
    %53 = arith.extui %52 : vector<8x32xi1> to vector<8x32xi32>
    %54 = arith.sitofp %53 : vector<8x32xi32> to vector<8x32xf32>
    %55 = vector.extract_strided_slice %2 {offsets = [0, 5], sizes = [8, 1], strides = [1, 1]} : vector<8x8xf32> to vector<8x1xf32>
    %56 = vector.broadcast %55 : vector<8x1xf32> to vector<8x32xf32>
    %57 = arith.mulf %54, %56 : vector<8x32xf32>
    %58 = arith.addf %49, %57 : vector<8x32xf32>
    %59 = vector.extract_strided_slice %0 {offsets = [0, 6], sizes = [8, 1], strides = [1, 1]} : vector<8x8xi32> to vector<8x1xi32>
    %60 = vector.broadcast %59 : vector<8x1xi32> to vector<8x32xi32>
    %61 = arith.cmpi eq, %60, %3 : vector<8x32xi32>
    %62 = arith.extui %61 : vector<8x32xi1> to vector<8x32xi32>
    %63 = arith.sitofp %62 : vector<8x32xi32> to vector<8x32xf32>
    %64 = vector.extract_strided_slice %2 {offsets = [0, 6], sizes = [8, 1], strides = [1, 1]} : vector<8x8xf32> to vector<8x1xf32>
    %65 = vector.broadcast %64 : vector<8x1xf32> to vector<8x32xf32>
    %66 = arith.mulf %63, %65 : vector<8x32xf32>
    %67 = arith.addf %58, %66 : vector<8x32xf32>
    %68 = vector.extract_strided_slice %0 {offsets = [0, 7], sizes = [8, 1], strides = [1, 1]} : vector<8x8xi32> to vector<8x1xi32>
    %69 = vector.broadcast %68 : vector<8x1xi32> to vector<8x32xi32>
    %70 = arith.cmpi eq, %69, %3 : vector<8x32xi32>
    %71 = arith.extui %70 : vector<8x32xi1> to vector<8x32xi32>
    %72 = arith.sitofp %71 : vector<8x32xi32> to vector<8x32xf32>
    %73 = vector.extract_strided_slice %2 {offsets = [0, 7], sizes = [8, 1], strides = [1, 1]} : vector<8x8xf32> to vector<8x1xf32>
    %74 = vector.broadcast %73 : vector<8x1xf32> to vector<8x32xf32>
    %75 = arith.mulf %72, %74 : vector<8x32xf32>
    %76 = arith.addf %67, %75 : vector<8x32xf32>
    %c0_3 = arith.constant 0 : index
    %c0_4 = arith.constant 0 : index
    %77 = vector.load %arg2[%c0_3, %c0_4] : memref<32x128xf32, #tpu.memory_space<vmem>>, vector<32x128xf32>
    %cst_5 = arith.constant dense<0.000000e+00> : vector<8x128xf32>
    %78 = tpu.matmul %76, %77, %cst_5 {dimension_numbers = #tpu.dot_dimension_numbers<[1], [0], [0], [1], [0, 0, 1, 1], [], []>} : vector<8x32xf32>, vector<32x128xf32>, vector<8x128xf32> -> vector<8x128xf32>
    %cst_6 = arith.constant dense<0.000000e+00> : vector<8xf32>
    %79 = vector.multi_reduction <add>, %2, %cst_6 [1] : vector<8x8xf32> to vector<8xf32>
    %80 = vector.shape_cast %79 : vector<8xf32> to vector<8x1xf32>
    %cst_7 = arith.constant 1.000000e+00 : f32
    %81 = vector.broadcast %cst_7 : f32 to vector<8x1xf32>
    %82 = arith.maximumf %80, %81 : vector<8x1xf32>
    %83 = vector.broadcast %82 : vector<8x1xf32> to vector<8x128xf32>
    %84 = arith.divf %78, %83 : vector<8x128xf32>
    %c0_8 = arith.constant 0 : index
    %c0_9 = arith.constant 0 : index
    %85 = vector.load %arg3[%c0_8, %c0_9] : memref<256x192xf32, #tpu.memory_space<vmem>>, vector<128x192xf32>
    %c128 = arith.constant 128 : index
    %c0_10 = arith.constant 0 : index
    %86 = vector.load %arg3[%c128, %c0_10] : memref<256x192xf32, #tpu.memory_space<vmem>>, vector<64x192xf32>
    %c192 = arith.constant 192 : index
    %c0_11 = arith.constant 0 : index
    %87 = vector.load %arg3[%c192, %c0_11] : memref<256x192xf32, #tpu.memory_space<vmem>>, vector<64x128xf32>
    %c0_12 = arith.constant 0 : index
    %c0_13 = arith.constant 0 : index
    %88 = vector.load %arg4[%c0_12, %c0_13] : memref<24x192xf32, #tpu.memory_space<vmem>>, vector<1x192xf32>
    %c8 = arith.constant 8 : index
    %c0_14 = arith.constant 0 : index
    %89 = vector.load %arg4[%c8, %c0_14] : memref<24x192xf32, #tpu.memory_space<vmem>>, vector<1x192xf32>
    %c16 = arith.constant 16 : index
    %c0_15 = arith.constant 0 : index
    %90 = vector.load %arg4[%c16, %c0_15] : memref<24x192xf32, #tpu.memory_space<vmem>>, vector<1x128xf32>
    %cst_16 = arith.constant dense<0.000000e+00> : vector<8x192xf32>
    %91 = tpu.matmul %84, %85, %cst_16 {dimension_numbers = #tpu.dot_dimension_numbers<[1], [0], [0], [1], [0, 0, 1, 1], [], []>} : vector<8x128xf32>, vector<128x192xf32>, vector<8x192xf32> -> vector<8x192xf32>
    %92 = vector.broadcast %88 : vector<1x192xf32> to vector<8x192xf32>
    %93 = arith.addf %91, %92 : vector<8x192xf32>
    %94 = vector.extract_strided_slice %93 {offsets = [0, 0], sizes = [8, 128], strides = [1, 1]} : vector<8x192xf32> to vector<8x128xf32>
    %95 = arith.negf %94 : vector<8x128xf32>
    %96 = math.exp %95 : vector<8x128xf32>
    %cst_17 = arith.constant 1.000000e+00 : f32
    %97 = vector.broadcast %cst_17 : f32 to vector<8x128xf32>
    %98 = arith.addf %97, %96 : vector<8x128xf32>
    %99 = arith.divf %97, %98 : vector<8x128xf32>
    %100 = vector.extract_strided_slice %99 {offsets = [0, 0], sizes = [8, 64], strides = [1, 1]} : vector<8x128xf32> to vector<8x64xf32>
    %101 = vector.extract_strided_slice %99 {offsets = [0, 64], sizes = [8, 64], strides = [1, 1]} : vector<8x128xf32> to vector<8x64xf32>
    %102 = vector.extract_strided_slice %93 {offsets = [0, 128], sizes = [8, 64], strides = [1, 1]} : vector<8x192xf32> to vector<8x64xf32>
    %103 = math.tanh %102 : vector<8x64xf32>
    %104 = arith.mulf %100, %103 : vector<8x64xf32>
    %105 = math.tanh %104 : vector<8x64xf32>
    %106 = arith.mulf %101, %105 : vector<8x64xf32>
    %cst_18 = arith.constant dense<0.000000e+00> : vector<8x192xf32>
    %107 = tpu.matmul %106, %86, %cst_18 {dimension_numbers = #tpu.dot_dimension_numbers<[1], [0], [0], [1], [0, 0, 1, 1], [], []>} : vector<8x64xf32>, vector<64x192xf32>, vector<8x192xf32> -> vector<8x192xf32>
    %108 = vector.broadcast %89 : vector<1x192xf32> to vector<8x192xf32>
    %109 = arith.addf %107, %108 : vector<8x192xf32>
    %110 = vector.extract_strided_slice %109 {offsets = [0, 0], sizes = [8, 128], strides = [1, 1]} : vector<8x192xf32> to vector<8x128xf32>
    %111 = arith.negf %110 : vector<8x128xf32>
    %112 = math.exp %111 : vector<8x128xf32>
    %cst_19 = arith.constant 1.000000e+00 : f32
    %113 = vector.broadcast %cst_19 : f32 to vector<8x128xf32>
    %114 = arith.addf %113, %112 : vector<8x128xf32>
    %115 = arith.divf %113, %114 : vector<8x128xf32>
    %116 = vector.extract_strided_slice %115 {offsets = [0, 0], sizes = [8, 64], strides = [1, 1]} : vector<8x128xf32> to vector<8x64xf32>
    %117 = vector.extract_strided_slice %115 {offsets = [0, 64], sizes = [8, 64], strides = [1, 1]} : vector<8x128xf32> to vector<8x64xf32>
    %118 = vector.extract_strided_slice %109 {offsets = [0, 128], sizes = [8, 64], strides = [1, 1]} : vector<8x192xf32> to vector<8x64xf32>
    %119 = math.tanh %118 : vector<8x64xf32>
    %120 = arith.mulf %116, %119 : vector<8x64xf32>
    %121 = math.tanh %120 : vector<8x64xf32>
    %122 = arith.mulf %117, %121 : vector<8x64xf32>
    %cst_20 = arith.constant dense<0.000000e+00> : vector<8x128xf32>
    %123 = tpu.matmul %122, %87, %cst_20 {dimension_numbers = #tpu.dot_dimension_numbers<[1], [0], [0], [1], [0, 0, 1, 1], [], []>} : vector<8x64xf32>, vector<64x128xf32>, vector<8x128xf32> -> vector<8x128xf32>
    %124 = vector.broadcast %90 : vector<1x128xf32> to vector<8x128xf32>
    %125 = arith.addf %123, %124 : vector<8x128xf32>
    %c0_21 = arith.constant 0 : index
    %c0_22 = arith.constant 0 : index
    %126 = vector.load %arg5[%c0_21, %c0_22] : memref<8x128xf32, #tpu.memory_space<vmem>>, vector<8x128xf32>
    tpu.vector_store %arg5[%c0_21, %c0_22], %125 {strides = array<i32>} : memref<8x128xf32, #tpu.memory_space<vmem>>, vector<8x128xf32>,
    return
  }
}

</mosaic_0001>

<bundles_post_ra>
// kernel: indobert_bilstm_predict.1
= control target key start
LH: loop header
LB: loop body
LE: loop exit
PB: predicated region body
PF: predicated region fallthrough
CT: control target
= control target key end

     0   :  { %v646_v0 = vmov 0   ;;  %v647_v4 = vmov 0.0   ;;  %v648_v5 = vmov 1   ;;  %v649_v6 = vmov 2   ;;  %s656_s10 = smov 64   ;;  %s936_s0 = inlined_call_operand.vmem [shape: s32[8,8], index: 0, kind: input, shape index: {}]   ;;  %s937_s1 = inlined_call_operand.vmem [shape: s32[8,8], index: 1, kind: input, shape index: {}]   ;;  %s938_s2 = inlined_call_operand.vmem [shape: f32[32,128], index: 2, kind: input, shape index: {}]   ;;  %s939_s3 = inlined_call_operand.vmem [shape: f32[256,192], index: 3, kind: input, shape index: {}]   ;;  %s940_s4 = inlined_call_operand.vmem [shape: f32[24,192], index: 4, kind: input, shape index: {}]   ;;  %s941_s5 = inlined_call_operand.vmem [shape: f32[8,128], index: 5, kind: output, shape index: {}]  }
   0x1   :  { %614 = vset.pattern.permute.xlu0 %v646_v0  ;;  %v20_v1 = vld [vmem:[%s936_s0] sm:$0xff]  ;;  %616 = vset.pattern.permute.xlu1 %v646_v0  ;;  %v650_v7 = vmov 4   ;;  %v651_v8 = vmov 3   ;;  %v652_v9 = vmov 5   ;;  %v653_v10 = vmov 7   ;;  %v125_v12 = vld [vmem:[%s938_s2 + $0x18] sm:$0xff] }
   0x2   :  { %v21_v2 = vld [vmem:[%s937_s1] sm:$0xff]  ;;  %26 = vperm.xlu0 %614, %v20_v1   ;;  %573 = vmatprep.subr.mxu0 %v647_v4  ;;  %v654_v11 = vmov 6   ;;  %v124_v13 = vld [vmem:[%s938_s2 + $0x10] sm:$0xff]  ;;  %v123_v14 = vld [vmem:[%s938_s2 + $0x8] sm:$0xff]  ;;  %vm655_vm0 = vmmov 0   ;;  %vm200_vm1 = vcmask 64512   ;;  %v23_v51 = vlaneseq }
   0x3   :  { %v693_v3 = vcvt.s32.f32 %v21_v2  ;;  %342 = vmatprep.mubr.f32.mxu1 %v647_v4  ;;  %574 = vmatpush3.msra.mxu0 %v125_v12  ;;  %v122_v15 = vld [vmem:[%s938_s2] sm:$0xff]  ;;  %v238_v16 = vld [vmem:[%s939_s3 + $0xf8] sm:$0xff]  ;;  %v237_v17 = vld [vmem:[%s939_s3 + $0xf0] sm:$0xff]  ;;  %vm126_vm10 = vcmask 261120   ;;  %vm377_vm11 = vcmask 523264  }
   0x4   :  { %575 = vmatprep.subr.mxu0 %v647_v4  ;;  %581 = vmatprep.mubr.msk.f32.mxu0 %vm655_vm0, %v647_v4  ;;  %v236_v18 = vld [vmem:[%s939_s3 + $0xe8] sm:$0xff]  ;;  %v235_v19 = vld [vmem:[%s939_s3 + $0xe0] sm:$0xff]  ;;  %v234_v20 = vld [vmem:[%s939_s3 + $0xd8] sm:$0xff]  ;;  %v24_v54 = vand.u32 127, %v23_v51 }
   0x5   :  { %33 = vperm.xlu1 %616, %v693_v3   ;;  %576 = vmatpush3.msra.mxu0 %v124_v13  ;;  %v233_v21 = vld [vmem:[%s939_s3 + $0xd0] sm:$0xff]  ;;  %v232_v22 = vld [vmem:[%s939_s3 + $0xc8] sm:$0xff]  ;;  %v231_v23 = vld [vmem:[%s939_s3 + $0xc0] sm:$0xff]  ;;  %v201_v30 = vsel %vm200_vm1, %v693_v3, 0.0 }
   0x6   :  { %615 = vset.pattern.permute.xlu0 %v648_v5  ;;  %577 = vmatprep.subr.mxu0 %v647_v4  ;;  %v230_v24 = vld [vmem:[%s939_s3 + $0xb8] sm:$0xff]  ;;  %v229_v25 = vld [vmem:[%s939_s3 + $0xb0] sm:$0xff]  ;;  %v228_v26 = vld [vmem:[%s939_s3 + $0xa8] sm:$0xff] }
   0x7   :  { %39 = vperm.xlu0 %615, %v20_v1   ;;  %578 = vmatpush3.msra.mxu0 %v123_v14  ;;  %v227_v27 = vld [vmem:[%s939_s3 + $0xa0] sm:$0xff]  ;;  %v226_v28 = vld [vmem:[%s939_s3 + $0x98] sm:$0xff]  ;;  %v225_v29 = vld [vmem:[%s939_s3 + $0x90] sm:$0xff] }
   0x8   :  { %579 = vmatprep.subr.mxu0 %v647_v4  ;;  %278 = vmatprep.subr.mxu1 %v238_v16  ;;  %v224_v31 = vld [vmem:[%s939_s3 + $0x88] sm:$0xff]  ;;  %v223_v32 = vld [vmem:[%s939_s3 + $0x80] sm:$0xff]  ;;  %v222_v33 = vld [vmem:[%s939_s3 + $0x78] sm:$0xff] }
   0x9   :  { %617 = vset.pattern.permute.xlu1 %v648_v5  ;;  %580 = vmatpush3.msra.mxu0 %v122_v15  ;;  %v221_v34 = vld [vmem:[%s939_s3 + $0x70] sm:$0xff]  ;;  %v220_v35 = vld [vmem:[%s939_s3 + $0x68] sm:$0xff]  ;;  %v219_v36 = vld [vmem:[%s939_s3 + $0x60] sm:$0xff] }
   0xa   :  { %45 = vperm.xlu1 %617, %v693_v3   ;;  %279 = vmatpush1.msra.mxu1 %v237_v17  ;;  %v218_v37 = vld [vmem:[%s939_s3 + $0x58] sm:$0xff]  ;;  %v217_v38 = vld [vmem:[%s939_s3 + $0x50] sm:$0xff]  ;;  %v216_v39 = vld [vmem:[%s939_s3 + $0x48] sm:$0xff] }
   0xb   :  { %619 = vset.pattern.permute.xlu0 %v649_v6  ;;  %280 = vmatprep.subr.mxu1 %v236_v18  ;;  %v215_v40 = vld [vmem:[%s939_s3 + $0x40] sm:$0xff]  ;;  %v214_v41 = vld [vmem:[%s939_s3 + $0x38] sm:$0xff]  ;;  %v213_v42 = vld [vmem:[%s939_s3 + $0x30] sm:$0xff] }
   0xc   :  { %57 = vperm.xlu0 %619, %v693_v3   ;;  %281 = vmatpush1.msra.mxu1 %v235_v19  ;;  %v212_v43 = vld [vmem:[%s939_s3 + $0x28] sm:$0xff]  ;;  %v211_v44 = vld [vmem:[%s939_s3 + $0x20] sm:$0xff]  ;;  %v210_v45 = vld [vmem:[%s939_s3 + $0x18] sm:$0xff] }
   0xd   :  { %282 = vmatprep.subr.mxu1 %v234_v20 }
   0xe   :  { %618 = vset.pattern.permute.xlu1 %v649_v6  ;;  %283 = vmatpush1.msra.mxu1 %v233_v21 }
   0xf   :  { %51 = vperm.xlu1 %618, %v20_v1   ;;  %284 = vmatprep.subr.mxu1 %v232_v22 }
  0x10   :  { %621 = vset.pattern.permute.xlu0 %v650_v7  ;;  %285 = vmatpush1.msra.mxu1 %v231_v23 }
  0x11   :  { %75 = vperm.xlu0 %621, %v20_v1   ;;  %286 = vmatprep.subr.mxu1 %v230_v24  ;;  %v209_v24 = vld [vmem:[%s939_s3 + $0x10] sm:$0xff] }
  0x12   :  { %287 = vmatpush1.msra.mxu1 %v229_v25  ;;  %v208_v25 = vld [vmem:[%s939_s3 + $0x8] sm:$0xff] }
  0x13   :  { %620 = vset.pattern.permute.xlu1 %v651_v8  ;;  %288 = vmatprep.subr.mxu1 %v228_v26  ;;  %v207_v26 = vld [vmem:[%s939_s3] sm:$0xff] }
  0x14   :  { %63 = vperm.xlu1 %620, %v20_v1   ;;  %289 = vmatpush1.msra.mxu1 %v227_v27 }
  0x15   :  { %624 = vset.pattern.permute.xlu0 %v652_v9  ;;  %290 = vmatprep.subr.mxu1 %v226_v28 }
  0x16   :  { %93 = vperm.xlu0 %624, %v693_v3   ;;  %291 = vmatpush1.msra.mxu1 %v225_v29 }
  0x17   :  { %292 = vmatprep.subr.mxu1 %v224_v31 }
  0x18   :  { %69 = vperm.xlu1 %620, %v693_v3   ;;  %293 = vmatpush1.msra.mxu1 %v223_v32 }
  0x19   :  { %294 = vmatprep.subr.mxu1 %v222_v33  ;;  %v828_v33 = vshrl.u32 %v23_v51, 7  ;;  %v252_v51 = vld [vmem:[%s939_s3 + $0x168] sm:$0xff] }
  0x1a   :  { %626 = vset.pattern.permute.xlu0 %v653_v10  ;;  %295 = vmatpush1.msra.mxu1 %v221_v34 }
  0x1b   :  { %111 = vperm.xlu0 %626, %v20_v1   ;;  %296 = vmatprep.subr.mxu1 %v220_v35  ;;  %v270_v34 = vsub.s32 0, %v828_v33  ;;  %v263_v35 = vld [vmem:[%s940_s4] ss:$8 sm:$0x3] }
  0x1c   :  { %622 = vset.pattern.permute.xlu1 %v650_v7  ;;  %297 = vmatpush1.msra.mxu1 %v219_v36 }
  0x1d   :  { %81 = vperm.xlu1 %622, %v693_v3   ;;  %298 = vmatprep.subr.mxu1 %v218_v37  ;;  %v271_v36 = vrot.slane %v263_v35, %v270_v34 }
  0x1e   :  { %299 = vmatpush1.msra.mxu1 %v217_v38 }
  0x1f   :  { %300 = vmatprep.subr.mxu1 %v216_v39 }
  0x20   :  { %301 = vmatpush1.msra.mxu1 %v215_v40  ;;  %v274_v40 = vsub.s32 1, %v828_v33 }
  0x21   :  { %623 = vset.pattern.permute.xlu1 %v652_v9  ;;  %302 = vmatprep.subr.mxu1 %v214_v41 }
  0x22   :  { %87 = vperm.xlu1 %623, %v20_v1   ;;  %303 = vmatpush1.msra.mxu1 %v213_v42  ;;  %v275_v41 = vrot.slane %v263_v35, %v274_v40 }
  0x23   :  { %304 = vmatprep.subr.mxu1 %v212_v43 }
  0x24   :  { %305 = vmatpush1.msra.mxu1 %v211_v44 }
  0x25   :  { %306 = vmatprep.subr.mxu1 %v210_v45 }
  0x26   :  { %625 = vset.pattern.permute.xlu1 %v654_v11  ;;  %307 = vmatpush1.msra.mxu1 %v209_v24  ;;  %v257_v24 = vld [vmem:[%s939_s3 + $0x1a0] sm:$0xff] }
  0x27   :  { %99 = vperm.xlu1 %625, %v20_v1   ;;  %308 = vmatprep.subr.mxu1 %v208_v25 }
  0x28   :  { %309 = vmatpush1.msra.mxu1 %v207_v26  ;;  %v256_v26 = vld [vmem:[%s939_s3 + $0x190] sm:$0xff] }
  0x2b   :  { %105 = vperm.xlu1 %625, %v693_v3  }
  0x2f   :  { %627 = vset.pattern.permute.xlu1 %v653_v10 }
  0x30   :  { %117 = vperm.xlu1 %627, %v693_v3  }
  0x54   :  { %202 = vadd.xlane.f32.xlu1 %v201_v30 }
  0x7d   :  { %v27_v49 = vpop.permute.xlu0 %26 }
  0x7e   :  { %vm28_vm3 = vcmp.eq.s32.totalorder %v27_v49, %v24_v54  ;;  %v254_v49 = vld [vmem:[%s939_s3 + $0x178] sm:$0xff] }
  0x7f   :  { %v545_v59 = vsel %vm28_vm3, 1.0, %v647_v4  ;;  %396 = vmatprep.subr.mxu0 %v254_v49 }
  0x80   :  { %v34_v46 = vpop.permute.xlu1 %33 }
  0x81   :  { %v36_v0 = vmul.f32 %v545_v59, %v34_v46  ;;  %v244_v59 = vld [vmem:[%s939_s3 + $0x128] sm:$0xff] }
  0x82   :  { %v40_v52 = vpop.permute.xlu0 %39 }
  0x83   :  { %vm41_vm2 = vcmp.eq.s32.totalorder %v40_v52, %v24_v54  ;;  %v251_v52 = vld [vmem:[%s939_s3 + $0x160] sm:$0xff] }
  0x84   :  { %v546_v57 = vsel %vm41_vm2, 1.0, %v647_v4 }
  0x85   :  { %v46_v47 = vpop.permute.xlu1 %45 }
  0x86   :  { %v48_v62 = vmul.f32 %v546_v57, %v46_v47  ;;  %v246_v57 = vld [vmem:[%s939_s3 + $0x138] sm:$0xff] }
  0x87   :  { %v58_v55 = vpop.permute.xlu0 %57 }
  0x88   :  { %v49_v5 = vadd.f32 %v48_v62, %v36_v0  ;;  %v242_v62 = vld [vmem:[%s939_s3 + $0x118] sm:$0xff]  ;;  %v240_v0 = vld [vmem:[%s939_s3 + $0x108] sm:$0xff] }
  0x8a   :  { %v52_v48 = vpop.permute.xlu1 %51 }
  0x8b   :  { %vm53_vm4 = vcmp.eq.s32.totalorder %v52_v48, %v24_v54 }
  0x8c   :  { %v76_v58 = vpop.permute.xlu0 %75  ;;  %v547_v60 = vsel %vm53_vm4, 1.0, %v647_v4 }
  0x8d   :  { %vm77_vm6 = vcmp.eq.s32.totalorder %v76_v58, %v24_v54  ;;  %v60_v1 = vmul.f32 %v547_v60, %v58_v55  ;;  %v248_v55 = vld [vmem:[%s939_s3 + $0x148] sm:$0xff]  ;;  %v245_v58 = vld [vmem:[%s939_s3 + $0x130] sm:$0xff]  ;;  %v243_v60 = vld [vmem:[%s939_s3 + $0x120] sm:$0xff] }
  0x8e   :  { %v549_v3 = vsel %vm77_vm6, 1.0, %v647_v4 }
  0x8f   :  { %v64_v50 = vpop.permute.xlu1 %63  ;;  %v61_v10 = vadd.f32 %v60_v1, %v49_v5  ;;  %v239_v1 = vld [vmem:[%s939_s3 + $0x100] sm:$0xff] }
  0x90   :  { %vm65_vm5 = vcmp.eq.s32.totalorder %v64_v50, %v24_v54  ;;  %v253_v50 = vld [vmem:[%s939_s3 + $0x170] sm:$0xff] }
  0x91   :  { %v94_v63 = vpop.permute.xlu0 %93  ;;  %v548_v2 = vsel %vm65_vm5, 1.0, %v647_v4 }
  0x93   :  { %v70_v53 = vpop.permute.xlu1 %69 }
  0x94   :  { %v72_v6 = vmul.f32 %v548_v2, %v70_v53  ;;  %v250_v53 = vld [vmem:[%s939_s3 + $0x158] sm:$0xff] }
  0x96   :  { %v112_v9 = vpop.permute.xlu0 %111  ;;  %v73_v12 = vadd.f32 %v72_v6, %v61_v10  ;;  %v554_v6 = vld [vmem:[%s940_s4 + $0x10] ss:$8 sm:$0x3] }
  0x97   :  { %vm113_vm9 = vcmp.eq.s32.totalorder %v112_v9, %v24_v54 }
  0x98   :  { %v82_v56 = vpop.permute.xlu1 %81  ;;  %v552_v18 = vsel %vm113_vm9, 1.0, %v647_v4 }
  0x99   :  { %v84_v11 = vmul.f32 %v549_v3, %v82_v56  ;;  %v247_v56 = vld [vmem:[%s939_s3 + $0x140] sm:$0xff] }
  0x9b   :  { %v85_v16 = vadd.f32 %v84_v11, %v73_v12  ;;  %v371_v11 = vrot.slane %v554_v6, %v274_v40 }
  0x9d   :  { %v88_v61 = vpop.permute.xlu1 %87 }
  0x9e   :  { %vm89_vm7 = vcmp.eq.s32.totalorder %v88_v61, %v24_v54 }
  0x9f   :  { %v550_v8 = vsel %vm89_vm7, 1.0, %v647_v4 }
  0xa0   :  { %v96_v13 = vmul.f32 %v550_v8, %v94_v63  ;;  %v241_v63 = vld [vmem:[%s939_s3 + $0x110] sm:$0xff] }
  0xa2   :  { %v100_v7 = vpop.permute.xlu1 %99  ;;  %v97_v19 = vadd.f32 %v96_v13, %v85_v16 }
  0xa3   :  { %vm101_vm8 = vcmp.eq.s32.totalorder %v100_v7, %v24_v54  ;;  %v249_v54 = vld [vmem:[%s939_s3 + $0x150] sm:$0xff]  ;;  %v367_v7 = vrot.slane %v554_v6, %v270_v34 }
  0xa4   :  { %v551_v15 = vsel %vm101_vm8, 1.0, %v647_v4 }
  0xa6   :  { %v106_v14 = vpop.permute.xlu1 %105 }
  0xa7   :  { %v108_v17 = vmul.f32 %v551_v15, %v106_v14 }
  0xa9   :  { %v109_v21 = vadd.f32 %v108_v17, %v97_v19  ;;  %v262_v19 = vld [vmem:[%s939_s3 + $0x1f0] sm:$0xff] }
  0xab   :  { %v118_v20 = vpop.permute.xlu1 %117 }
  0xac   :  { %v120_v22 = vmul.f32 %v552_v18, %v118_v20  ;;  %v261_v20 = vld [vmem:[%s939_s3 + $0x1e0] sm:$0xff] }
  0xae   :  { %v121_v23 = vadd.f32 %v120_v22, %v109_v21  ;;  %v260_v21 = vld [vmem:[%s939_s3 + $0x1d0] sm:$0xff]  ;;  %v259_v22 = vld [vmem:[%s939_s3 + $0x1c0] sm:$0xff] }
  0xb0   :  { %582 = vmatmul.mubr.msk.f32.vlgmr.msra.gmra.mxu0 %vm126_vm10, %v121_v23  ;;  %v258_v23 = vld [vmem:[%s939_s3 + $0x1b0] sm:$0xff] }
  0xb1   :  { %444 = vmatprep.mubr.f32.mxu0 %v647_v4  ;;  %397 = vmatpush1.msra.mxu0 %v253_v50 }
  0xb2   :  { %398 = vmatprep.subr.mxu0 %v252_v51 }
  0xb3   :  { %399 = vmatpush1.msra.mxu0 %v251_v52 }
  0xb4   :  { %400 = vmatprep.subr.mxu0 %v250_v53 }
  0xb5   :  { %401 = vmatpush1.msra.mxu0 %v249_v54 }
  0xb6   :  { %402 = vmatprep.subr.mxu0 %v248_v55 }
  0xb7   :  { %403 = vmatpush1.msra.mxu0 %v247_v56 }
  0xb8   :  { %404 = vmatprep.subr.mxu0 %v246_v57 }
  0xb9   :  { %405 = vmatpush1.msra.mxu0 %v245_v58 }
  0xba   :  { %406 = vmatprep.subr.mxu0 %v244_v59 }
  0xbb   :  { %407 = vmatpush1.msra.mxu0 %v243_v60 }
  0xbc   :  { %408 = vmatprep.subr.mxu0 %v242_v62 }
  0xbd   :  { %409 = vmatpush1.msra.mxu0 %v241_v63 }
  0xbe   :  { %410 = vmatprep.subr.mxu0 %v240_v0 }
  0xbf   :  { %411 = vmatpush1.msra.mxu0 %v239_v1 }
  0xc0   :  { %584 = vmatprep.subr.mxu0 %v647_v4 }
  0xdd   :  { %v203_v27 = vpop.xlane.xlu1 %202 }
  0xde   :  { %v204_v28 = vmax.f32 %v203_v27, 1.0  ;;  %v255_v27 = vld [vmem:[%s939_s3 + $0x180] sm:$0xff] }
  0xe0   :  { %628 = vrcp.f32 %v204_v28 }
  0xed   :  { %v629_v29 = vpop.eup %628 }
 0x170   :  { %v196_v30 = vpop.f32.mrf.mxu0 }
 0x171   :  { %v206_v31 = vmul.f32 %v629_v29, %v196_v30 }
 0x172   :  { %v583_v32 = vpop.f32.mrf.mxu0 }
 0x173   :  { %343 = vmatmul.mubr.f32.vlgmr.msra.gmra.mxu1 %v206_v31  ;;  %v266_v31 = vld [vmem:[%s940_s4 + $0x20] ss:$0 sm:$0xff] }
 0x233   :  { %v344_v37 = vpop.f32.mrf.mxu1 }
 0x234   :  { %v345_v38 = vadd.f32 %v344_v37, %v271_v36 }
 0x235   :  { %v346_v42 = vpop.f32.mrf.mxu1 }
 0x236   :  { %v555_v39 = vmul.f32 -1.442695, %v345_v38  ;;  %v347_v43 = vadd.f32 %v346_v42, %v275_v41 }
 0x238   :  { %630 = vpow2.f32 %v555_v39 }
 0x239   :  { %632 = vtanh.f32 %v347_v43 }
 0x245   :  { %v631_v44 = vpop.eup %630 }
 0x246   :  { %v352_v45 = vadd.f32 1.0, %v631_v44  ;;  %v633_v46 = vpop.eup %632 }
 0x248   :  { %634 = vrcp.f32 %v352_v45 }
 0x255   :  { %v635_v47 = vpop.eup %634 }
 0x256   :  { %v356_v48 = vmul.f32 %v635_v47, %v633_v46 }
 0x258   :  { %636 = vtanh.f32 %v356_v48 }
 0x265   :  { %v637_v61 = vpop.eup %636 }
 0x266   :  { %359 = vrot.lane.b32.xlu0 %v637_v61, %s656_s10 }
 0x2d8   :  { %v360_v2 = vpop.permute.xlu0 %359 }
 0x2d9   :  { %v362_v3 = vmul.f32 %v635_v47, %v360_v2 }
 0x2db   :  { %375 = vrot.lane.b32.xlu0 %v362_v3, %s656_s10 }
 0x34d   :  { %v376_v5 = vpop.permute.xlu0 %375 }
 0x34e   :  { %556 = vmatmul.mubr.msk.f32.vlgmr.msra.gmra.mxu0 %vm377_vm11, %v376_v5 }
 0x34f   :  { %600 = vmatprep.mubr.msk.f32.mxu0 %vm655_vm0, %v647_v4  ;;  %585 = vmatpush3.msra.mxu0 %v262_v19 }
 0x350   :  { %586 = vmatprep.subr.mxu0 %v647_v4 }
 0x351   :  { %587 = vmatpush3.msra.mxu0 %v261_v20 }
 0x352   :  { %588 = vmatprep.subr.mxu0 %v647_v4 }
 0x353   :  { %589 = vmatpush3.msra.mxu0 %v260_v21 }
 0x354   :  { %590 = vmatprep.subr.mxu0 %v647_v4 }
 0x355   :  { %591 = vmatpush3.msra.mxu0 %v259_v22 }
 0x356   :  { %592 = vmatprep.subr.mxu0 %v647_v4 }
 0x357   :  { %593 = vmatpush3.msra.mxu0 %v258_v23 }
 0x358   :  { %594 = vmatprep.subr.mxu0 %v647_v4 }
 0x359   :  { %595 = vmatpush3.msra.mxu0 %v257_v24 }
 0x35a   :  { %596 = vmatprep.subr.mxu0 %v647_v4 }
 0x35b   :  { %597 = vmatpush3.msra.mxu0 %v256_v26 }
 0x35c   :  { %598 = vmatprep.subr.mxu0 %v647_v4 }
 0x35d   :  { %599 = vmatpush3.msra.mxu0 %v255_v27 }
 0x40e   :  { %v446_v8 = vpop.f32.mrf.mxu0 }
 0x40f   :  { %v447_v9 = vadd.f32 %v446_v8, %v367_v7 }
 0x410   :  { %v448_v12 = vpop.f32.mrf.mxu0 }
 0x411   :  { %v557_v10 = vmul.f32 -1.442695, %v447_v9  ;;  %v449_v13 = vadd.f32 %v448_v12, %v371_v11 }
 0x413   :  { %638 = vpow2.f32 %v557_v10 }
 0x414   :  { %640 = vtanh.f32 %v449_v13 }
 0x420   :  { %v639_v14 = vpop.eup %638 }
 0x421   :  { %v454_v15 = vadd.f32 1.0, %v639_v14  ;;  %v641_v16 = vpop.eup %640 }
 0x423   :  { %642 = vrcp.f32 %v454_v15 }
 0x430   :  { %v643_v17 = vpop.eup %642 }
 0x431   :  { %v458_v18 = vmul.f32 %v643_v17, %v641_v16 }
 0x433   :  { %644 = vtanh.f32 %v458_v18 }
 0x440   :  { %v645_v25 = vpop.eup %644 }
 0x441   :  { %461 = vrot.lane.b32.xlu0 %v645_v25, %s656_s10 }
 0x4b3   :  { %v462_v28 = vpop.permute.xlu0 %461 }
 0x4b4   :  { %v464_v29 = vmul.f32 %v643_v17, %v462_v28 }
 0x4b6   :  { %466 = vrot.lane.b32.xlu0 %v464_v29, %s656_s10 }
 0x528   :  { %v467_v30 = vpop.permute.xlu0 %466 }
 0x529   :  { %601 = vmatmul.mubr.msk.f32.vlgmr.msra.gmra.mxu0 %vm377_vm11, %v467_v30 }
 0x5e9   :  { %v536_v32 = vpop.f32.mrf.mxu0 }
 0x5ea   :  { %v537_v33 = vadd.f32 %v536_v32, %v266_v31 }
 0x5eb   :  { %v602_v34 = vpop.f32.mrf.mxu0 }
 0x5ec   :  { %540 = vst [vmem:[%s941_s5] sm:$0xff] %v537_v33 }

</bundles_post_ra>
